<compile_context>
chip_gen: v7x
topology: tpu7x:2x2x1
jax: 0.10.0
libtpu: 0.0.40
codegen_flags: <defaults>
</compile_context>

<pallas_src>
import functools

import jax
import jax.numpy as jnp
from jax.experimental import pallas as pl
from jax.experimental.pallas import tpu as pltpu

INPUT_DIM = 10
HIDDEN_DIM = 64
OUTPUT_DIM = 10

_SMALL_BATCH = 1024               # below this a single full-extent block is fine
_DEFAULT_TILE_B = 8192            # batch rows per grid step (sweep 8K-16K at f32)
_VMEM_LIMIT_BYTES = 48 * 1024 * 1024   # v7x-safe scoped limit; plenty on v5e/v6e


def _mlp_kernel(x_ref, w1_ref, b1_ref, w2_ref, b2_ref, o_ref):
    """One batch tile: y = relu(x @ W1^T + b1) @ W2^T + b2.

    x_ref : (tile_b, INPUT_DIM)      natural layout, streamed from HBM
    w1_ref: (HIDDEN_DIM, INPUT_DIM)  pinned (PyTorch nn.Linear layout)
    b1_ref: (HIDDEN_DIM, 1) f32      pinned
    w2_ref: (OUTPUT_DIM, HIDDEN_DIM) pinned
    b2_ref: (OUTPUT_DIM, 1) f32      pinned
    o_ref : (tile_b, OUTPUT_DIM)     natural layout, streamed to HBM
    """
    x = x_ref[...]
    # h^T = W1 @ x^T: contract INPUT_DIM of both operands -> (HIDDEN_DIM, tile_b).
    # Batch lives on the 128-lane axis (lane-dense); no materialized transpose.
    ht = jax.lax.dot_general(
        w1_ref[...], x,
        dimension_numbers=(((1,), (1,)), ((), ())),
        preferred_element_type=jnp.float32)
    # Bias + ReLU in f32 (v5e's VPU has no bf16); (HIDDEN_DIM, 1) broadcasts over lanes.
    ht = jnp.maximum(ht + b1_ref[...], 0.0)
    # y^T = W2 @ h^T + b2 -> (OUTPUT_DIM, tile_b), still lane-dense.
    yt = jnp.dot(w2_ref[...], ht.astype(w2_ref.dtype),
                 preferred_element_type=jnp.float32) + b2_ref[...]
    # Flip to the consumer's natural (tile_b, OUTPUT_DIM) layout in-kernel
    # (XLU transpose, hidden under the tile DMA) so y crosses HBM exactly once.
    o_ref[...] = jnp.transpose(yt).astype(o_ref.dtype)


def _round_down_to(n, m):
    return (n // m) * m


def _choose_tile_b(batch, requested):
    """Pick the batch-tile (sublane) size for the grid.

    - Small batches: one full-extent block (any size is a legal full-dim block).
    - Otherwise a multiple of 8 (sublane constraint), never exceeding the batch,
      capped at ceil(batch / 2) so large batches always get >= 2 grid steps
      (lets dimension_semantics=("parallel",) shard across both v7x TensorCores;
      no-op on single-TC v5e/v6e).
    """
    requested = max(int(requested), 8)
    if batch <= _SMALL_BATCH and batch <= requested:
        return batch
    tb = min(requested, batch)
    if batch > _SMALL_BATCH:
        tb = min(tb, -(-batch // 2))           # cdiv(batch, 2)
    return max(8, _round_down_to(tb, 8))


@functools.partial(jax.jit, static_argnames=("tile_b",))
def regression_net_forward(x, w1, b1, w2, b2, *, tile_b=_DEFAULT_TILE_B):
    """Forward pass of RegressionNet: relu(x @ w1.T + b1) @ w2.T + b2.

    x : (B, INPUT_DIM)   float32 (exact nn.Linear parity) or bfloat16
                         (halved HBM streaming; f32 MXU accumulation).
    w1: (HIDDEN_DIM, INPUT_DIM)   (PyTorch nn.Linear layout)
    b1: (HIDDEN_DIM,)
    w2: (OUTPUT_DIM, HIDDEN_DIM)
    b2: (OUTPUT_DIM,)
    Returns (B, OUTPUT_DIM) in x.dtype.
    """
    B = x.shape[0]
    assert x.shape == (B, INPUT_DIM)
    tb = _choose_tile_b(B, tile_b)
    grid = (pl.cdiv(B, tb),)

    # Streamed operands follow x.dtype; weights are tiny (<20 KB) so casting
    # them to match is free.  Biases stay f32 (added to the f32 accumulation).
    w1c = w1.astype(x.dtype)
    w2c = w2.astype(x.dtype)
    b1_2d = b1.reshape(HIDDEN_DIM, 1).astype(jnp.float32)
    b2_2d = b2.reshape(OUTPUT_DIM, 1).astype(jnp.float32)

    return pl.pallas_call(
        _mlp_kernel,
        out_shape=jax.ShapeDtypeStruct((B, OUTPUT_DIM), x.dtype),
        grid=grid,
        in_specs=[
            # x streams over the batch-tile grid in its natural HBM layout.
            # The ragged tail block is clipped by Pallas; its junk rows are
            # per-row independent and never written back.
            pl.BlockSpec((tb, INPUT_DIM), lambda i: (i, 0)),
            # Weights / biases pinned with a constant index_map: fetched once,
            # VMEM-resident across the whole grid.
            # (pl.Buffered(1) single-buffering skipped: would only save a few KB.)
            pl.BlockSpec((HIDDEN_DIM, INPUT_DIM), lambda i: (0, 0)),
            pl.BlockSpec((HIDDEN_DIM, 1), lambda i: (0, 0)),
            pl.BlockSpec((OUTPUT_DIM, HIDDEN_DIM), lambda i: (0, 0)),
            pl.BlockSpec((OUTPUT_DIM, 1), lambda i: (0, 0)),
        ],
        # Natural (tile_b, OUTPUT_DIM) output -> no wrapper transpose/slice at all.
        out_specs=pl.BlockSpec((tb, OUTPUT_DIM), lambda i: (i, 0)),
        compiler_params=pltpu.CompilerParams(
            dimension_semantics=("parallel",),       # megacore split on v7x
            vmem_limit_bytes=_VMEM_LIMIT_BYTES,
        ),
    )(x, w1c, b1_2d, w2c, b2_2d)


def init_params(key):
    """Deterministic init mirroring nn.Linear's U(-1/sqrt(fan_in), 1/sqrt(fan_in)).

    Weights are kept in PyTorch layout: (out_features, in_features).
    """
    k1, k2, k3, k4 = jax.random.split(key, 4)
    bound1 = 1.0 / jnp.sqrt(INPUT_DIM)
    bound2 = 1.0 / jnp.sqrt(HIDDEN_DIM)
    w1 = jax.random.uniform(k1, (HIDDEN_DIM, INPUT_DIM), jnp.float32, -bound1, bound1)
    b1 = jax.random.uniform(k2, (HIDDEN_DIM,), jnp.float32, -bound1, bound1)
    w2 = jax.random.uniform(k3, (OUTPUT_DIM, HIDDEN_DIM), jnp.float32, -bound2, bound2)
    b2 = jax.random.uniform(k4, (OUTPUT_DIM,), jnp.float32, -bound2, bound2)
    return w1, b1, w2, b2


def _reference(x, w1, b1, w2, b2):
    # Plain JAX reference matching the PyTorch module exactly (f32 math).
    xf = x.astype(jnp.float32)
    h = jnp.maximum(xf @ w1.T + b1, 0.0)
    return h @ w2.T + b2


if __name__ == "__main__":
    key = jax.random.PRNGKey(0)
    k_x1, k_x2, k_p = jax.random.split(key, 3)
    w1, b1, w2, b2 = init_params(k_p)

    # 1) Small batch -> single full-extent block.
    B1 = 64
    x1 = jax.random.normal(k_x1, (B1, INPUT_DIM), jnp.float32)
    out1 = regression_net_forward(x1, w1, b1, w2, b2)
    jax.block_until_ready(out1)
    ref1 = _reference(x1, w1, b1, w2, b2)
    assert out1.shape == (B1, OUTPUT_DIM) and out1.dtype == jnp.float32
    assert jnp.allclose(out1, ref1, atol=1e-5, rtol=1e-5)

    # 2) Multi-step grid with a ragged tail block (tile_b=128, B=200).
    B2 = 200
    x2 = jax.random.normal(k_x2, (B2, INPUT_DIM), jnp.float32)
    out2 = regression_net_forward(x2, w1, b1, w2, b2, tile_b=128)
    jax.block_until_ready(out2)
    ref2 = _reference(x2, w1, b1, w2, b2)
    assert out2.shape == (B2, OUTPUT_DIM)
    assert jnp.allclose(out2, ref2, atol=1e-5, rtol=1e-5)

    # 3) bf16 streaming path (halves HBM traffic; looser numerics by design).
    out3 = regression_net_forward(x2.astype(jnp.bfloat16), w1, b1, w2, b2, tile_b=128)
    jax.block_until_ready(out3)
    assert out3.shape == (B2, OUTPUT_DIM) and out3.dtype == jnp.bfloat16
    assert jnp.allclose(out3.astype(jnp.float32), ref2, atol=1e-1, rtol=1e-1)

    print("KERNEL_OK")
</pallas_src>

<mosaic_0001>
module attributes {stable_mosaic.version = 11 : i64} {
  func.func @_mlp_kernel(%arg0: i32, %arg1: memref<64x10xf32, #tpu.memory_space<vmem>>, %arg2: memref<64x10xf32, #tpu.memory_space<vmem>>, %arg3: memref<64x1xf32, #tpu.memory_space<vmem>>, %arg4: memref<10x64xf32, #tpu.memory_space<vmem>>, %arg5: memref<10x1xf32, #tpu.memory_space<vmem>>, %arg6: memref<64x10xf32, #tpu.memory_space<vmem>>) attributes {dimension_semantics = [#tpu.dimension_semantics<parallel>], iteration_bounds = array<i64: 1>, scalar_prefetch = 0 : i64, scratch_operands = 0 : i64, tpu.core_type = #tpu.core_type<tc>, window_params = [{transform_indices = @transform_0, window_bounds = array<i64: 64, 10>}, {pipeline_mode = #tpu.pipeline_mode<synchronous>, transform_indices = @transform_1, window_bounds = array<i64: 64, 10>}, {pipeline_mode = #tpu.pipeline_mode<synchronous>, transform_indices = @transform_2, window_bounds = array<i64: 64, 1>}, {pipeline_mode = #tpu.pipeline_mode<synchronous>, transform_indices = @transform_3, window_bounds = array<i64: 10, 64>}, {pipeline_mode = #tpu.pipeline_mode<synchronous>, transform_indices = @transform_4, window_bounds = array<i64: 10, 1>}, {transform_indices = @transform_5, window_bounds = array<i64: 64, 10>}]} {
    %c0 = arith.constant 0 : index
    %c0_0 = arith.constant 0 : index
    %0 = vector.load %arg1[%c0, %c0_0] : memref<64x10xf32, #tpu.memory_space<vmem>>, vector<64x10xf32>
    %c0_1 = arith.constant 0 : index
    %c0_2 = arith.constant 0 : index
    %1 = vector.load %arg2[%c0_1, %c0_2] : memref<64x10xf32, #tpu.memory_space<vmem>>, vector<64x10xf32>
    %cst = arith.constant dense<0.000000e+00> : vector<64x64xf32>
    %2 = tpu.matmul %1, %0, %cst {dimension_numbers = #tpu.dot_dimension_numbers<[1], [1], [0], [0], [0, 0, 1, 0], [], []>} : vector<64x10xf32>, vector<64x10xf32>, vector<64x64xf32> -> vector<64x64xf32>
    %c0_3 = arith.constant 0 : index
    %c0_4 = arith.constant 0 : index
    %3 = vector.load %arg3[%c0_3, %c0_4] : memref<64x1xf32, #tpu.memory_space<vmem>>, vector<64x1xf32>
    %4 = vector.broadcast %3 : vector<64x1xf32> to vector<64x64xf32>
    %5 = arith.addf %2, %4 : vector<64x64xf32>
    %cst_5 = arith.constant 0.000000e+00 : f32
    %6 = vector.broadcast %cst_5 : f32 to vector<64x64xf32>
    %7 = arith.maximumf %5, %6 : vector<64x64xf32>
    %c0_6 = arith.constant 0 : index
    %c0_7 = arith.constant 0 : index
    %8 = vector.load %arg4[%c0_6, %c0_7] : memref<10x64xf32, #tpu.memory_space<vmem>>, vector<10x64xf32>
    %cst_8 = arith.constant dense<0.000000e+00> : vector<10x64xf32>
    %9 = tpu.matmul %8, %7, %cst_8 {dimension_numbers = #tpu.dot_dimension_numbers<[1], [0], [0], [1], [0, 0, 1, 1], [], []>} : vector<10x64xf32>, vector<64x64xf32>, vector<10x64xf32> -> vector<10x64xf32>
    %c0_9 = arith.constant 0 : index
    %c0_10 = arith.constant 0 : index
    %10 = vector.load %arg5[%c0_9, %c0_10] : memref<10x1xf32, #tpu.memory_space<vmem>>, vector<10x1xf32>
    %11 = vector.broadcast %10 : vector<10x1xf32> to vector<10x64xf32>
    %12 = arith.addf %9, %11 : vector<10x64xf32>
    %13 = tpu.transpose %12, [1, 0] : vector<10x64xf32> -> vector<64x10xf32>
    %c0_11 = arith.constant 0 : index
    %c0_12 = arith.constant 0 : index
    %14 = vector.load %arg6[%c0_11, %c0_12] : memref<64x10xf32, #tpu.memory_space<vmem>>, vector<64x10xf32>
    tpu.vector_store %arg6[%c0_11, %c0_12], %13 {strides = array<i32>} : memref<64x10xf32, #tpu.memory_space<vmem>>, vector<64x10xf32>,
    return
  }
  func.func @transform_0(%arg0: i32) -> (i32, i32) {
    %c0_i32 = arith.constant 0 : i32
    %c0_i32_0 = arith.constant 0 : i32
    return %arg0, %c0_i32 : i32, i32
  }
  func.func @transform_1(%arg0: i32) -> (i32, i32) {
    %c0_i32 = arith.constant 0 : i32
    %c0_i32_0 = arith.constant 0 : i32
    %c0_i32_1 = arith.constant 0 : i32
    return %c0_i32, %c0_i32_0 : i32, i32
  }
  func.func @transform_2(%arg0: i32) -> (i32, i32) {
    %c0_i32 = arith.constant 0 : i32
    %c0_i32_0 = arith.constant 0 : i32
    %c0_i32_1 = arith.constant 0 : i32
    return %c0_i32, %c0_i32_0 : i32, i32
  }
  func.func @transform_3(%arg0: i32) -> (i32, i32) {
    %c0_i32 = arith.constant 0 : i32
    %c0_i32_0 = arith.constant 0 : i32
    %c0_i32_1 = arith.constant 0 : i32
    return %c0_i32, %c0_i32_0 : i32, i32
  }
  func.func @transform_4(%arg0: i32) -> (i32, i32) {
    %c0_i32 = arith.constant 0 : i32
    %c0_i32_0 = arith.constant 0 : i32
    %c0_i32_1 = arith.constant 0 : i32
    return %c0_i32, %c0_i32_0 : i32, i32
  }
  func.func @transform_5(%arg0: i32) -> (i32, i32) {
    %c0_i32 = arith.constant 0 : i32
    %c0_i32_0 = arith.constant 0 : i32
    return %arg0, %c0_i32 : i32, i32
  }
}

</mosaic_0001>

<bundles_post_ra>
// kernel: regression_net_forward.1
= control target key start
LH: loop header
LB: loop body
LE: loop exit
PB: predicated region body
PF: predicated region fallthrough
CT: control target
= control target key end

     0   :  { %vm84_vm0 = vcmask 80896   ;;  %v521_v3 = vmov 0   ;;  %vm260_vm2 = vcmask 523264   ;;  %s700_s0 = inlined_call_operand.vmem [shape: f32[64,10], index: 0, kind: input, shape index: {}]   ;;  %s701_s1 = inlined_call_operand.vmem [shape: f32[64,10], index: 1, kind: input, shape index: {}]   ;;  %s702_s2 = inlined_call_operand.vmem [shape: f32[64,1], index: 2, kind: input, shape index: {}]   ;;  %s703_s4 = inlined_call_operand.vmem [shape: f32[10,1], index: 4, kind: input, shape index: {}]   ;;  %s704_s3 = inlined_call_operand.vmem [shape: f32[10,64], index: 3, kind: input, shape index: {}]   ;;  %s705_s5 = inlined_call_operand.vmem [shape: f32[64,10], index: 5, kind: output, shape index: {}]  }
   0x1   :  { %v20_v0 = vld [vmem:[%s700_s0] sm:$0xff]  ;;  %v21_v1 = vld [vmem:[%s700_s0 + $0x8] sm:$0xff]  ;;  %vm560_vm1 = vmpackc.low %vm84_vm0, %vm84_vm0  ;;  %519 = vset.pattern.permute.xlu0 %v521_v3  ;;  %520 = vset.pattern.permute.xlu1 %v521_v3 }
   0x2   :  { %v477_v4 = vpack.c.bf16 %v21_v1, %v20_v0  ;;  %v22_v5 = vld [vmem:[%s700_s0 + $0x10] sm:$0xff]  ;;  %v23_v6 = vld [vmem:[%s700_s0 + $0x18] sm:$0xff]  ;;  %v28_v8 = vld [vmem:[%s701_s1] sm:$0xff] }
   0x3   :  { %v483_v7 = vpack.c.bf16 %v23_v6, %v22_v5  ;;  %446 = vmatprep.mubr.msk.f32.mxu0 %vm84_vm0, %v28_v8  ;;  %v36_v9 = vld [vmem:[%s702_s2] sm:$0xff]  ;;  %v25_v11 = vld [vmem:[%s700_s0 + $0x28] sm:$0xff]  ;;  %v38_v12 = vld [vmem:[%s702_s2 + $0x10] sm:$0xff] }
   0x4   :  { %479 = vmatprep.subr.msk.bf16.mxu0 %vm560_vm1, %v477_v4  ;;  %v24_v10 = vld [vmem:[%s700_s0 + $0x20] sm:$0xff]  ;;  %46 = vperm.xlu0 %519, %v36_v9   ;;  %v37_v13 = vld [vmem:[%s702_s2 + $0x8] sm:$0xff]  ;;  %v39_v14 = vld [vmem:[%s702_s2 + $0x18] sm:$0xff] }
   0x5   :  { %482 = vmatpush3.bf16.xpose.msk.msra.mxu0 %vm560_vm1, %v477_v4  ;;  %56 = vperm.xlu1 %520, %v38_v12   ;;  %v489_v15 = vpack.c.bf16 %v25_v11, %v24_v10  ;;  %v40_v16 = vld [vmem:[%s702_s2 + $0x20] sm:$0xff]  ;;  %v41_v17 = vld [vmem:[%s702_s2 + $0x28] sm:$0xff]  ;;  %v26_v18 = vld [vmem:[%s700_s0 + $0x30] sm:$0xff] }
   0x6   :  { %485 = vmatprep.subr.msk.bf16.mxu0 %vm560_vm1, %v483_v7  ;;  %v27_v19 = vld [vmem:[%s700_s0 + $0x38] sm:$0xff]  ;;  %v42_v20 = vld [vmem:[%s702_s2 + $0x30] sm:$0xff]  ;;  %v248_v23 = vld [vmem:[%s703_s4] sm:$0xff] }
   0x7   :  { %v43_v21 = vld [vmem:[%s702_s2 + $0x38] sm:$0xff]  ;;  %v495_v22 = vpack.c.bf16 %v27_v19, %v26_v18  ;;  %v249_v24 = vld [vmem:[%s703_s4 + $0x8] sm:$0x3]  ;;  %v30_v26 = vld [vmem:[%s701_s1 + $0x10] sm:$0xff] }
   0x8   :  { %51 = vperm.xlu0 %519, %v37_v13   ;;  %v29_v25 = vld [vmem:[%s701_s1 + $0x8] sm:$0xff]  ;;  %v31_v27 = vld [vmem:[%s701_s1 + $0x18] sm:$0xff]  ;;  %v32_v28 = vld [vmem:[%s701_s1 + $0x20] sm:$0xff] }
   0x9   :  { %61 = vperm.xlu1 %520, %v39_v14   ;;  %v33_v29 = vld [vmem:[%s701_s1 + $0x28] sm:$0xff]  ;;  %v34_v30 = vld [vmem:[%s701_s1 + $0x30] sm:$0xff]  ;;  %v35_v31 = vld [vmem:[%s701_s1 + $0x38] sm:$0xff] }
   0xa   :  { %v246_v32 = vld [vmem:[%s704_s3] sm:$0xff]  ;;  %v247_v5 = vld [vmem:[%s704_s3 + $0x8] sm:$0x3] }
   0xb   :  { %474 = vmatprep.mubr.msk.f32.mxu1 %vm260_vm2, %v246_v32 }
   0xc   :  { %66 = vperm.xlu0 %519, %v40_v16  }
   0xd   :  { %488 = vmatpush3.bf16.xpose.msk.msra.mxu0 %vm560_vm1, %v483_v7  ;;  %71 = vperm.xlu1 %520, %v41_v17  }
   0xe   :  { %491 = vmatprep.subr.msk.bf16.mxu0 %vm560_vm1, %v489_v15 }
  0x10   :  { %76 = vperm.xlu0 %519, %v42_v20  }
  0x11   :  { %81 = vperm.xlu1 %520, %v43_v21  }
  0x14   :  { %252 = vperm.xlu0 %519, %v248_v23  }
  0x15   :  { %494 = vmatpush3.bf16.xpose.msk.msra.mxu0 %vm560_vm1, %v489_v15  ;;  %257 = vperm.xlu1 %520, %v249_v24  }
  0x16   :  { %497 = vmatprep.subr.msk.bf16.mxu0 %vm560_vm1, %v495_v22 }
  0x1d   :  { %500 = vmatpush3.bf16.xpose.msk.msra.mxu0 %vm560_vm1, %v495_v22 }
  0x24   :  { %447 = vmatmul.mubr.msk.f32.vlgmr.msra.gmra.mrb[0].mxu0 %vm84_vm0, %v29_v25 }
  0x25   :  { %449 = vmatprep.mubr.msk.f32.mxu0 %vm84_vm0, %v30_v26 }
  0x28   :  { %450 = vmatmul.mubr.msk.f32.gmra.mrb[2].mxu0 %vm84_vm0, %v31_v27 }
  0x29   :  { %452 = vmatprep.mubr.msk.f32.mxu0 %vm84_vm0, %v32_v28 }
  0x2c   :  { %453 = vmatmul.mubr.msk.f32.gmra.mrb[4].mxu0 %vm84_vm0, %v33_v29 }
  0x2d   :  { %455 = vmatprep.mubr.msk.f32.mxu0 %vm84_vm0, %v34_v30 }
  0x30   :  { %456 = vmatmul.mubr.msk.f32.gmra.mrb[6].mxu0 %vm84_vm0, %v35_v31 }
  0x83   :  { %v47_v33 = vpop.permute.xlu0 %46 }
  0x84   :  { %v57_v34 = vpop.permute.xlu1 %56 }
  0x87   :  { %v52_v35 = vpop.permute.xlu0 %51 }
  0x88   :  { %v62_v36 = vpop.permute.xlu1 %61 }
  0x8b   :  { %v67_v49 = vpop.permute.xlu0 %66 }
  0x8c   :  { %v72_v46 = vpop.permute.xlu1 %71 }
  0x8f   :  { %v77_v61 = vpop.permute.xlu0 %76 }
  0x90   :  { %v82_v58 = vpop.permute.xlu1 %81 }
  0x93   :  { %v253_v7 = vpop.permute.xlu0 %252 }
  0x94   :  { %v258_v10 = vpop.permute.xlu1 %257 }
  0xf7   :  { %v448_v37 = vpop.f32.mrb[0].mxu0 }
  0xf8   :  { %v205_v38 = vadd.f32 %v448_v37, %v52_v35  ;;  %v199_v39 = vpop.f32.mrb[1].mxu0 }
  0xf9   :  { %v200_v40 = vadd.f32 %v199_v39, %v47_v33 }
  0xfa   :  { %v239_v41 = vmax.f32 %v205_v38, 0.0 }
  0xfb   :  { %v238_v42 = vmax.f32 %v200_v40, 0.0  ;;  %v451_v43 = vpop.f32.mrb[2].mxu0 }
  0xfc   :  { %v215_v44 = vadd.f32 %v451_v43, %v62_v36  ;;  %v209_v45 = vpop.f32.mrb[3].mxu0 }
  0xfd   :  { %v210_v47 = vadd.f32 %v209_v45, %v57_v34  ;;  %v501_v48 = vpack.c.bf16 %v239_v41, %v238_v42 }
  0xfe   :  { %v241_v50 = vmax.f32 %v215_v44, 0.0 }
  0xff   :  { %v240_v51 = vmax.f32 %v210_v47, 0.0  ;;  %v454_v52 = vpop.f32.mrb[4].mxu0  ;;  %502 = vmatprep.subr.bf16.mxu1 %v501_v48 }
 0x100   :  { %v225_v53 = vadd.f32 %v454_v52, %v72_v46  ;;  %v219_v54 = vpop.f32.mrb[5].mxu0  ;;  %504 = vmatpush3.bf16.msra.mxu1 %v501_v48 }
 0x101   :  { %v505_v55 = vpack.c.bf16 %v241_v50, %v240_v51  ;;  %v220_v56 = vadd.f32 %v219_v54, %v67_v49 }
 0x102   :  { %v243_v57 = vmax.f32 %v225_v53, 0.0 }
 0x103   :  { %v242_v59 = vmax.f32 %v220_v56, 0.0  ;;  %v457_v60 = vpop.f32.mrb[6].mxu0  ;;  %506 = vmatprep.subr.bf16.mxu1 %v505_v55 }
 0x104   :  { %v235_v62 = vadd.f32 %v457_v60, %v82_v58  ;;  %v229_v63 = vpop.f32.mrb[7].mxu0  ;;  %508 = vmatpush3.bf16.msra.mxu1 %v505_v55 }
 0x105   :  { %v509_v0 = vpack.c.bf16 %v243_v57, %v242_v59  ;;  %v230_v1 = vadd.f32 %v229_v63, %v77_v61 }
 0x106   :  { %v245_v2 = vmax.f32 %v235_v62, 0.0 }
 0x107   :  { %v244_v3 = vmax.f32 %v230_v1, 0.0  ;;  %510 = vmatprep.subr.bf16.mxu1 %v509_v0 }
 0x108   :  { %512 = vmatpush3.bf16.msra.mxu1 %v509_v0 }
 0x109   :  { %v513_v4 = vpack.c.bf16 %v245_v2, %v244_v3 }
 0x10b   :  { %514 = vmatprep.subr.bf16.mxu1 %v513_v4 }
 0x10c   :  { %516 = vmatpush3.bf16.msra.mxu1 %v513_v4 }
 0x10f   :  { %475 = vmatmul.mubr.msk.f32.vlgmr.msra.gmra.mrb[0].mxu1 %vm260_vm2, %v247_v5 }
 0x1e2   :  { %v476_v6 = vpop.f32.mrb[0].mxu1 }
 0x1e3   :  { %v333_v8 = vpop.f32.mrb[1].mxu1  ;;  %v339_v11 = vadd.f32 %v476_v6, %v258_v10 }
 0x1e4   :  { %v334_v9 = vadd.f32 %v333_v8, %v253_v7 }
 0x1e6   :  { %342 = vxpose.xlu0.b32.start [1/2] (short) (narrow) %v334_v9, 64 }
 0x1ea   :  { %343 = vxpose.xlu0.b32.end [2/2] (short) (narrow) %v339_v11, 64 }
 0x266   :  { %v358_v12 = vpop.trf.xlu0 }
 0x267   :  { %374 = vst.msk [vmem:[%s705_s5] sm:$0xff] %vm84_vm0, %v358_v12 }
 0x26a   :  { %v359_v13 = vpop.trf.xlu0 }
 0x26b   :  { %375 = vst.msk [vmem:[%s705_s5 + $0x8] sm:$0xff] %vm84_vm0, %v359_v13 }
 0x26e   :  { %v360_v14 = vpop.trf.xlu0 }
 0x26f   :  { %376 = vst.msk [vmem:[%s705_s5 + $0x10] sm:$0xff] %vm84_vm0, %v360_v14 }
 0x272   :  { %v361_v15 = vpop.trf.xlu0 }
 0x273   :  { %377 = vst.msk [vmem:[%s705_s5 + $0x18] sm:$0xff] %vm84_vm0, %v361_v15 }
 0x276   :  { %v362_v16 = vpop.trf.xlu0 }
 0x277   :  { %378 = vst.msk [vmem:[%s705_s5 + $0x20] sm:$0xff] %vm84_vm0, %v362_v16 }
 0x27a   :  { %v363_v17 = vpop.trf.xlu0 }
 0x27b   :  { %379 = vst.msk [vmem:[%s705_s5 + $0x28] sm:$0xff] %vm84_vm0, %v363_v17 }
 0x27e   :  { %v364_v18 = vpop.trf.xlu0 }
 0x27f   :  { %380 = vst.msk [vmem:[%s705_s5 + $0x30] sm:$0xff] %vm84_vm0, %v364_v18 }
 0x282   :  { %v365_v19 = vpop.trf.xlu0 }
 0x283   :  { %381 = vst.msk [vmem:[%s705_s5 + $0x38] sm:$0xff] %vm84_vm0, %v365_v19 }

</bundles_post_ra>
